<compile_context>
chip_gen: v7x
topology: tpu7x:2x2x1
jax: 0.10.0
libtpu: 0.0.40
codegen_flags: <defaults>
</compile_context>

<pallas_src>
import functools
import math

import jax
import jax.numpy as jnp
import numpy as np
from jax.experimental import pallas as pl
from jax.experimental.pallas import tpu as pltpu


# ---------------------------------------------------------------------------
# Pallas kernel: grid step = (batch element n, HW output tile t)
# ---------------------------------------------------------------------------
def _channel_attention_kernel(x_ref, w1_ref, w2_ref, o_ref, att_ref, *,
                              hw, hw_pad, tile):
    """x_ref  : (1, C, HW_pad) full (padded) feature map for batch n,
                resident across all t steps (index_map is t-invariant)
       w1_ref : (Ch, C)  fc1 1x1-conv weight, PyTorch (out, in) layout
       w2_ref : (C, Ch)  fc2 1x1-conv weight, PyTorch (out, in) layout
       o_ref  : (1, C, tile) output tile t of batch n
       att_ref: (C, 1) VMEM scratch; per-channel gate, computed at t == 0
    """
    t = pl.program_id(1)

    @pl.when(t == 0)
    def _():
        x = x_ref[0].astype(jnp.float32)                      # (C, HW_pad)

        # Global pools.  Zero padding contributes nothing to the sum; the
        # mean divides by the *true* HW.  The max masks padded lanes so
        # all-negative channels stay correct.
        avg = jnp.sum(x, axis=1, keepdims=True) * (1.0 / hw)  # (C, 1)
        if hw_pad != hw:
            lane = jax.lax.broadcasted_iota(jnp.int32, x.shape, 1)
            x_for_max = jnp.where(lane < hw, x, -jnp.inf)
        else:
            x_for_max = x
        mx = jnp.max(x_for_max, axis=1, keepdims=True)        # (C, 1)

        # Shared MLP on both pooled vectors in ONE pass over w1/w2.
        # pooled[:, 0] = avg, pooled[:, 1] = mx (lane-select, no concat).
        col = jax.lax.broadcasted_iota(jnp.int32, (x.shape[0], 2), 1)
        pooled = jnp.where(col == 0, avg, mx)                  # (C, 2)

        w1 = w1_ref[...].astype(jnp.float32)
        w2 = w2_ref[...].astype(jnp.float32)
        h = jnp.maximum(
            jnp.dot(w1, pooled, preferred_element_type=jnp.float32), 0.0)
        # fc2 is linear => summing the two ReLU branches before fc2 is exact.
        z = jnp.dot(w2, jnp.sum(h, axis=1, keepdims=True),
                    preferred_element_type=jnp.float32)        # (C, 1)

        # Sigmoid: exp goes to the EUP; the divide is a (C,1) sliver
        # (hygiene-level cost, kept exact).
        att_ref[...] = 1.0 / (1.0 + jnp.exp(-z))

    # Gate this HW tile: broadcast the per-channel attention over the lanes.
    start = pl.multiple_of(t * tile, 128)
    x_tile = x_ref[0, :, pl.ds(start, tile)]                   # (C, tile)
    o_ref[0] = (x_tile.astype(jnp.float32) * att_ref[...]).astype(o_ref.dtype)


# ---------------------------------------------------------------------------
# Wrapper
# ---------------------------------------------------------------------------
def channel_attention_pallas(x, w1, w2, *, lane_tile=1024):
    """ChannelAttention forward.

    x : (N, C, H, W)        (PyTorch NCHW convention)
    w1: (C // reduction, C) fc1 weight (Conv2d weight[:, :, 0, 0])
    w2: (C, C // reduction) fc2 weight
    lane_tile: target lane width of one output tile (rounded to /128).
    returns (N, C, H, W): sigmoid(MLP(avgpool) + MLP(maxpool)) * x
    """
    N, C, H, W = x.shape
    HW = H * W
    Ch = w1.shape[0]
    assert w1.shape == (Ch, C) and w2.shape == (C, Ch)

    # Lane-dense flatten; pad HW up to a multiple of 128 so the store-bound
    # gate phase issues full (unmasked) vector stores.
    HW_pad = ((HW + 127) // 128) * 128
    xf = x.reshape(N, C, HW)
    if HW_pad != HW:
        xf = jnp.pad(xf, ((0, 0), (0, 0), (0, HW_pad - HW)))

    # Output HW tile: largest multiple of 128 that divides HW_pad, <= lane_tile.
    tile = min(HW_pad, max(128, (lane_tile // 128) * 128))
    while HW_pad % tile != 0:
        tile -= 128
    num_t = HW_pad // tile

    itemsize = jnp.dtype(x.dtype).itemsize
    # Residency: input double-buffer (full HW_pad per batch element), output
    # double-buffer (one tile), both weights double-buffered, att scratch.
    resident = (2 * C * HW_pad * itemsize
                + 2 * C * tile * itemsize
                + 4 * Ch * C * jnp.dtype(w1.dtype).itemsize
                + 8 * 128 * 4)
    # Margin for compiler-internal scratch; capped at v7x physical VMEM.
    vmem_limit = min(max(int(resident * 1.5) + (1 << 20), 8 * 1024 * 1024),
                     64 * 1024 * 1024)

    kernel = functools.partial(_channel_attention_kernel,
                               hw=HW, hw_pad=HW_pad, tile=tile)

    flops = int(N * (3 * C * HW + 8 * C * Ch))          # pools + gate + MLP
    bytes_accessed = int(2 * N * C * HW * itemsize
                         + 2 * C * Ch * jnp.dtype(w1.dtype).itemsize)

    out = pl.pallas_call(
        kernel,
        out_shape=jax.ShapeDtypeStruct((N, C, HW_pad), x.dtype),
        grid=(N, num_t),
        in_specs=[
            # Full feature map per batch element; t-invariant -> one DMA per n.
            pl.BlockSpec((1, C, HW_pad), lambda n, t: (n, 0, 0)),
            pl.BlockSpec((Ch, C), lambda n, t: (0, 0)),
            pl.BlockSpec((C, Ch), lambda n, t: (0, 0)),
        ],
        out_specs=pl.BlockSpec((1, C, tile), lambda n, t: (n, 0, t)),
        scratch_shapes=[pltpu.VMEM((C, 1), jnp.float32)],   # att gate
        compiler_params=pltpu.CompilerParams(
            dimension_semantics=("parallel", "arbitrary"),
            vmem_limit_bytes=vmem_limit),
        cost_estimate=pl.CostEstimate(flops=flops,
                                      transcendentals=int(N * C),
                                      bytes_accessed=bytes_accessed),
    )(xf, w1, w2)

    if HW_pad != HW:
        out = out[:, :, :HW]
    return out.reshape(N, C, H, W)


# ---------------------------------------------------------------------------
# Pure-JAX reference (mirrors the PyTorch module) for the in-script self-check
# ---------------------------------------------------------------------------
def channel_attention_ref(x, w1, w2):
    avg = jnp.mean(x, axis=(2, 3))            # (N, C)
    mx = jnp.max(x, axis=(2, 3))              # (N, C)

    def mlp(v):                               # fc2(relu(fc1(v)))
        return jnp.maximum(v @ w1.T, 0.0) @ w2.T

    z = mlp(avg) + mlp(mx)                    # (N, C)
    att = 1.0 / (1.0 + jnp.exp(-z))           # sigmoid
    return x * att[:, :, None, None]


# ---------------------------------------------------------------------------
if __name__ == "__main__":
    key = jax.random.PRNGKey(0)
    kx, k1, k2, kx2 = jax.random.split(key, 4)

    # Shapes consistent with the module (reduction=16 requires C >= 16).
    N, C, H, W = 2, 32, 16, 16
    reduction = 16
    Ch = C // reduction

    x = jax.random.normal(kx, (N, C, H, W), jnp.float32)
    # 1x1-conv weights (bias=False), PyTorch (out_channels, in_channels) layout.
    w1 = jax.random.normal(k1, (Ch, C), jnp.float32) / math.sqrt(C)
    w2 = jax.random.normal(k2, (C, Ch), jnp.float32) / math.sqrt(Ch)

    # Case 1: lane-aligned HW (256); force a small lane_tile so the grid has
    # multiple HW tiles and the att-scratch reuse across t is exercised.
    out = jax.block_until_ready(channel_attention_pallas(x, w1, w2,
                                                         lane_tile=128))
    ref = channel_attention_ref(x, w1, w2)
    assert out.shape == x.shape and out.dtype == x.dtype
    err = float(np.max(np.abs(np.asarray(out) - np.asarray(ref))))
    assert np.allclose(np.asarray(out), np.asarray(ref),
                       atol=1e-4, rtol=1e-4), err

    # Case 2: HW = 14*14 = 196 (NOT a multiple of 128) with mostly-negative
    # activations -> exercises the pad-to-128 path and the masked max pool.
    x2 = jax.random.normal(kx2, (N, C, 14, 14), jnp.float32) - 3.0
    out2 = jax.block_until_ready(channel_attention_pallas(x2, w1, w2))
    ref2 = channel_attention_ref(x2, w1, w2)
    err2 = float(np.max(np.abs(np.asarray(out2) - np.asarray(ref2))))
    assert np.allclose(np.asarray(out2), np.asarray(ref2),
                       atol=1e-4, rtol=1e-4), err2

    print("KERNEL_OK")
</pallas_src>

<mosaic_0001>
module attributes {stable_mosaic.version = 11 : i64} {
  func.func @_channel_attention_kernel(%arg0: i32, %arg1: i32, %arg2: memref<1x32x256xf32, #tpu.memory_space<vmem>>, %arg3: memref<2x32xf32, #tpu.memory_space<vmem>>, %arg4: memref<32x2xf32, #tpu.memory_space<vmem>>, %arg5: memref<1x32x128xf32, #tpu.memory_space<vmem>>, %arg6: memref<32x1xf32, #tpu.memory_space<vmem>>) attributes {dimension_semantics = [#tpu.dimension_semantics<parallel>, #tpu.dimension_semantics<arbitrary>], iteration_bounds = array<i64: 2, 2>, scalar_prefetch = 0 : i64, scratch_operands = 1 : i64, tpu.core_type = #tpu.core_type<tc>, window_params = [{transform_indices = @transform_0, window_bounds = array<i64: 1, 32, 256>}, {pipeline_mode = #tpu.pipeline_mode<synchronous>, transform_indices = @transform_1, window_bounds = array<i64: 2, 32>}, {pipeline_mode = #tpu.pipeline_mode<synchronous>, transform_indices = @transform_2, window_bounds = array<i64: 32, 2>}, {transform_indices = @transform_3, window_bounds = array<i64: 1, 32, 128>}]} {
    %c0_i32 = arith.constant 0 : i32
    %0 = arith.cmpi eq, %arg1, %c0_i32 : i32
    %1 = arith.extui %0 : i1 to i32
    %c0_i32_0 = arith.constant 0 : i32
    %2 = arith.cmpi ne, %1, %c0_i32_0 : i32
    scf.if %2 {
      %c0_7 = arith.constant 0 : index
      %c0_8 = arith.constant 0 : index
      %c0_9 = arith.constant 0 : index
      %14 = vector.load %arg2[%c0_7, %c0_8, %c0_9] : memref<1x32x256xf32, #tpu.memory_space<vmem>>, vector<1x32x256xf32>
      %15 = vector.shape_cast %14 : vector<1x32x256xf32> to vector<32x256xf32>
      %cst = arith.constant dense<0.000000e+00> : vector<32xf32>
      %16 = vector.multi_reduction <add>, %15, %cst [1] : vector<32x256xf32> to vector<32xf32>
      %17 = vector.shape_cast %16 : vector<32xf32> to vector<32x1xf32>
      %cst_10 = arith.constant 3.906250e-03 : f32
      %18 = vector.broadcast %cst_10 : f32 to vector<32x1xf32>
      %19 = arith.mulf %17, %18 : vector<32x1xf32>
      %cst_11 = arith.constant dense<0xFF800000> : vector<32xf32>
      %20 = vector.multi_reduction <maximumf>, %15, %cst_11 [1] : vector<32x256xf32> to vector<32xf32>
      %21 = vector.shape_cast %20 : vector<32xf32> to vector<32x1xf32>
      %22 = tpu.iota {dimensions = array<i32: 1>} : vector<32x2xi32>
      %c0_i32_12 = arith.constant 0 : i32
      %23 = vector.broadcast %c0_i32_12 : i32 to vector<32x2xi32>
      %24 = arith.cmpi eq, %22, %23 : vector<32x2xi32>
      %25 = vector.shape_cast %19 : vector<32x1xf32> to vector<32x1xf32>
      %26 = vector.broadcast %25 : vector<32x1xf32> to vector<32x2xf32>
      %27 = vector.shape_cast %21 : vector<32x1xf32> to vector<32x1xf32>
      %28 = vector.broadcast %27 : vector<32x1xf32> to vector<32x2xf32>
      %29 = arith.select %24, %26, %28 : vector<32x2xi1>, vector<32x2xf32>
      %c0_13 = arith.constant 0 : index
      %c0_14 = arith.constant 0 : index
      %30 = vector.load %arg3[%c0_13, %c0_14] : memref<2x32xf32, #tpu.memory_space<vmem>>, vector<2x32xf32>
      %c0_15 = arith.constant 0 : index
      %c0_16 = arith.constant 0 : index
      %31 = vector.load %arg4[%c0_15, %c0_16] : memref<32x2xf32, #tpu.memory_space<vmem>>, vector<32x2xf32>
      %cst_17 = arith.constant dense<0.000000e+00> : vector<2x2xf32>
      %32 = tpu.matmul %30, %29, %cst_17 {dimension_numbers = #tpu.dot_dimension_numbers<[1], [0], [0], [1], [0, 0, 1, 1], [], []>} : vector<2x32xf32>, vector<32x2xf32>, vector<2x2xf32> -> vector<2x2xf32>
      %cst_18 = arith.constant 0.000000e+00 : f32
      %33 = vector.broadcast %cst_18 : f32 to vector<2x2xf32>
      %34 = arith.maximumf %32, %33 : vector<2x2xf32>
      %cst_19 = arith.constant dense<0.000000e+00> : vector<2xf32>
      %35 = vector.multi_reduction <add>, %34, %cst_19 [1] : vector<2x2xf32> to vector<2xf32>
      %36 = vector.shape_cast %35 : vector<2xf32> to vector<2x1xf32>
      %cst_20 = arith.constant dense<0.000000e+00> : vector<32x1xf32>
      %37 = tpu.matmul %31, %36, %cst_20 {dimension_numbers = #tpu.dot_dimension_numbers<[1], [0], [0], [1], [0, 0, 1, 1], [], []>} : vector<32x2xf32>, vector<2x1xf32>, vector<32x1xf32> -> vector<32x1xf32>
      %cst_21 = arith.constant 0.000000e+00 : f32
      %38 = vector.broadcast %cst_21 : f32 to vector<32x1xf32>
      %39 = arith.subf %38, %37 : vector<32x1xf32>
      %40 = math.exp %39 : vector<32x1xf32>
      %cst_22 = arith.constant 1.000000e+00 : f32
      %41 = vector.broadcast %cst_22 : f32 to vector<32x1xf32>
      %42 = arith.addf %41, %40 : vector<32x1xf32>
      %cst_23 = arith.constant 1.000000e+00 : f32
      %43 = vector.broadcast %cst_23 : f32 to vector<32x1xf32>
      %44 = arith.divf %43, %42 : vector<32x1xf32>
      %c0_24 = arith.constant 0 : index
      %c0_25 = arith.constant 0 : index
      %45 = vector.load %arg6[%c0_24, %c0_25] : memref<32x1xf32, #tpu.memory_space<vmem>>, vector<32x1xf32>
      tpu.vector_store %arg6[%c0_24, %c0_25], %44 {strides = array<i32>} : memref<32x1xf32, #tpu.memory_space<vmem>>, vector<32x1xf32>,
    } else {
    }
    %c128_i32 = arith.constant 128 : i32
    %3 = arith.muli %arg1, %c128_i32 : i32
    %4 = tpu.assume_multiple %3, 128 : i32
    %c0 = arith.constant 0 : index
    %c0_1 = arith.constant 0 : index
    %5 = arith.index_cast %4 : i32 to index
    %6 = vector.load %arg2[%c0, %c0_1, %5] : memref<1x32x256xf32, #tpu.memory_space<vmem>>, vector<1x32x128xf32>
    %7 = vector.shape_cast %6 : vector<1x32x128xf32> to vector<32x128xf32>
    %c0_2 = arith.constant 0 : index
    %c0_3 = arith.constant 0 : index
    %8 = vector.load %arg6[%c0_2, %c0_3] : memref<32x1xf32, #tpu.memory_space<vmem>>, vector<32x1xf32>
    %9 = vector.broadcast %8 : vector<32x1xf32> to vector<32x128xf32>
    %10 = arith.mulf %7, %9 : vector<32x128xf32>
    %c0_4 = arith.constant 0 : index
    %c0_5 = arith.constant 0 : index
    %c0_6 = arith.constant 0 : index
    %11 = vector.load %arg5[%c0_4, %c0_5, %c0_6] : memref<1x32x128xf32, #tpu.memory_space<vmem>>, vector<1x32x128xf32>
    %12 = vector.shape_cast %11 : vector<1x32x128xf32> to vector<32x128xf32>
    %13 = vector.shape_cast %10 : vector<32x128xf32> to vector<1x32x128xf32>
    tpu.vector_store %arg5[%c0_4, %c0_5, %c0_6], %13 {strides = array<i32>} : memref<1x32x128xf32, #tpu.memory_space<vmem>>, vector<1x32x128xf32>,
    return
  }
  func.func @transform_0(%arg0: i32, %arg1: i32) -> (i32, i32, i32) {
    %c0_i32 = arith.constant 0 : i32
    %c0_i32_0 = arith.constant 0 : i32
    %c0_i32_1 = arith.constant 0 : i32
    return %arg0, %c0_i32, %c0_i32_0 : i32, i32, i32
  }
  func.func @transform_1(%arg0: i32, %arg1: i32) -> (i32, i32) {
    %c0_i32 = arith.constant 0 : i32
    %c0_i32_0 = arith.constant 0 : i32
    %c0_i32_1 = arith.constant 0 : i32
    return %c0_i32, %c0_i32_0 : i32, i32
  }
  func.func @transform_2(%arg0: i32, %arg1: i32) -> (i32, i32) {
    %c0_i32 = arith.constant 0 : i32
    %c0_i32_0 = arith.constant 0 : i32
    %c0_i32_1 = arith.constant 0 : i32
    return %c0_i32, %c0_i32_0 : i32, i32
  }
  func.func @transform_3(%arg0: i32, %arg1: i32) -> (i32, i32, i32) {
    %c0_i32 = arith.constant 0 : i32
    %c0_i32_0 = arith.constant 0 : i32
    return %arg0, %c0_i32, %arg1 : i32, i32, i32
  }
}

</mosaic_0001>

<bundles_post_ra>
// kernel: tpu_custom_call.1
= control target key start
LH: loop header
LB: loop body
LE: loop exit
PB: predicated region body
PF: predicated region fallthrough
CT: control target
= control target key end

     0   :  { %8 = vsyncpa [#allocation4], 0  ;;  %s1244_s0 = inlined_call_operand.hbm [shape: f32[2,32,256], index: 0, kind: input, shape index: {}]   ;;  %s1245_s1 = inlined_call_operand.vmem [shape: f32[2,32], index: 1, kind: input, shape index: {}]   ;;  %s1246_s2 = inlined_call_operand.vmem [shape: f32[32,2], index: 2, kind: input, shape index: {}]   ;;  %s1247_s3 = inlined_call_operand.hbm [shape: f32[2,32,256], index: 3, kind: output, shape index: {}]  }
   0x1   :  { %10 = vsyncpa [#allocation4 + $0x1], 0 }
   0x2   :  { %11 = vsyncpa [#allocation5], 0 }
   0x3   :  { %13 = vsyncpa [#allocation5 + $0x1], 0  ;;  %s983_s12 = smov 0   ;;  %s985_s13 = smov 0  }
   0x4   :  { %s987_s14 = smov 0   ;;  %s989_s15 = smov 0  }
   0x5   :  { %s991_s16 = smov 0   ;;  %s993_s17 = smov 0  }
   0x6   :  { %s995_s18 = smov 0   ;;  %s997_s19 = smov 0  }
   0x7   :  { %s999_s20 = smov 0   ;;  %s1001_s21 = smov 0  }
   0x8   :  { %s1003_s22 = smov 0  }
   0x9 LB: > { %s609_s23 = sadd.s32 4294967295, %s950_s22   ;;  %s610_s24 = sadd.s32 4294967294, %s950_s22   ;;  %s950_s22 = sphi %s1003_s22, %s19_s22   ;;  %s946_s21 = sphi %s1001_s21, %s1269_s21   ;;  %s942_s20 = sphi %s999_s20, %s1268_s20   ;;  %s938_s19 = sphi %s997_s19, %s1267_s19   ;;  %s934_s18 = sphi %s995_s18, %s1266_s18   ;;  %s930_s17 = sphi %s993_s17, %s1265_s17   ;;  %s926_s16 = sphi %s991_s16, %s1264_s16   ;;  %s922_s15 = sphi %s989_s15, %s1263_s15   ;;  %s918_s14 = sphi %s987_s14, %s1262_s14   ;;  %s914_s13 = sphi %s985_s13, %s1261_s13   ;;  %s910_s12 = sphi %s983_s12, %s1260_s12  }
   0xa   : > { %s28_s25 = sadd.s32 1, %s942_s20  ;;  %s31_s26 = sadd.s32 1, %s946_s21 }
   0xb   : > { %p29_p0 = scmp.ge.s32.totalorder %s28_s25, 2  ;;  %s38_s27 = sadd.s32 1, %s930_s17 }
   0xc   : > { %p45_p1 = scmp.ne.s32.totalorder %s930_s17, %s926_s16  ;;  %p46_p2 = scmp.eq.s32.totalorder %s950_s22, 0 }
   0xd   : > { %s1271_s25 = smov (%p29_p0, %s28_s25), 0  ;;  %s1273_s26 = smov (!%p29_p0, %s31_s26), %s946_s21 }
   0xe   : > { %p1047_p3 = por %p46_p2, %p45_p1  ;;  %p51_p4 = scmp.ne.s32.totalorder %s926_s16, %s922_s15 }
   0xf   : > { %p33_p5 = scmp.ge.s32.totalorder %s1273_s26, 2  ;;  %p52_p6 = scmp.eq.s32.totalorder %s609_s23, 0 }
  0x10   : > { %s104_s29 = ssub.s32 %s942_s20, %s1271_s25  ;;  %s108_s30 = sadd.s32 1, %s918_s14 }
  0x11   : > { %s1275_s26 = smov (%p33_p5, %s1273_s26), 0  ;;  %p1057_p7 = por %p52_p6, %p51_p4 }
  0x12   : > { %1251 = sst [smem:[#allocation9_spill]] %s1275_s26  ;;  %p118_p8 = scmp.ne.s32.totalorder %s918_s14, %s914_s13 }
  0x13   : > { %s35_s5 = ssub.s32 %s946_s21, %s1275_s26  ;;  %p119_p9 = scmp.eq.s32.totalorder %s609_s23, 3 }
  0x14   : > { %p36_p10 = scmp.eq.s32.totalorder %s35_s5, 0  ;;  %s105_s6 = sor.u32 %s104_s29, %s35_s5 }
  0x15   : > { %p106_p11 = scmp.eq.s32.totalorder %s105_s6, 0  ;;  %p1065_p12 = por %p119_p9, %p118_p8 }
  0x16   : > { %s1070_s8 = scalar_select %p36_p10, %s930_s17, %s38_s27  }
  0x17   : > { %s1253_s7 = scalar_select %p1065_p12, 1, 0 }
  0x18   : > { %s1073_s9 = scalar_select %p106_p11, %s918_s14, %s108_s30  }
  0x19   : > { %p124_p13 = scmp.ne.s32.totalorder %s914_s13, %s910_s12  ;;  %p125_p0 = scmp.eq.s32.totalorder %s610_s24, 3 }
  0x1a   : > { %p681_p1 = scmp.lt.s32.totalorder %s950_s22, 4  ;;  %s151_s11 = sand.u32 1, %s930_s17  }
  0x1b   : > { %p1078_p2 = por %p125_p0, %p124_p13  ;;  %s613_s15 = sshll.u32 %s151_s11, 6 }
  0x1c   : > { %s633_s23 = sshll.u32 %s946_s21, 10  ;;  %s155_s27 = scalar_lea.vmem [#allocation3], %s613_s15 }
  0x1d   : > { %s1254_s10 = scalar_select %p1078_p2, 1, 0 }
  0x1e   : > { %s1087_s6 = scalar_lea.hbm %s1244_s0, %s633_s23  ;;  %s162_s30 = sshll.u32 %s155_s27, 4  ;;  %s1089_s30 = int_to_ptr.vmem [resolvable:$true] %s162_s30 }
  0x1f   : > { %p1093_p4 = pnand %p681_p1, %p1047_p3  ;;  %s1098_s26 = scalar_lea.sflag [#allocation4], %s151_s11 }
  0x20   : > { %s798_s23 = scalar_lea.hbm %s1087_s6, 1024  ;;  %s803_s28 = scalar_lea.hbm %s1244_s0, 2048 }
  0x21   : > { %p799_p6 = scmp.ne.s32.totalorder %s1087_s6, %s798_s23  ;;  %p800_p8 = pneg %p1093_p4 }
  0x22   : > { %p804_p3 = scmp.lt.u32.totalorder %s1087_s6, %s1244_s0  ;;  %p805_p11 = scmp.lt.u32.totalorder %s803_s28, %s798_s23 }
  0x23   : > { %p801_p9 = pnand %p800_p8, %p799_p6  ;;  %p807_p0 = scmp.lt.u32.totalorder %s798_s23, %s1087_s6 }
  0x24   : > { %p806_p13 = por %p805_p11, %p804_p3 }
  0x25   : > { %p802_p10 = pneg %p801_p9 }
  0x26   : > { %p808_p1 = por %p807_p0, %p806_p13 }
  0x28   : > { %p809_p5 = pnand %p808_p1, %p802_p10 }
  0x2a   : > { %812 = shalt.err (!%p809_p5)
}
  0x2b   : > { %s813_s11 = scalar_lea.vmem %s1089_s30, 1024  ;;  %s952_s15 = smov [#allocation3]  }
  0x2c   : > { %p814_p6 = scmp.ne.s32.totalorder %s1089_s30, %s813_s11  ;;  %s818_s29 = sshll.u32 %s952_s15, 4  ;;  %s819_s29 = int_to_ptr.vmem [resolvable:$false] %s818_s29 }
  0x2d   : > { %s820_s5 = scalar_lea.vmem %s819_s29, 2048  ;;  %p821_p12 = scmp.lt.s32.totalorder %s1089_s30, %s819_s29 }
  0x2e   : > { %p816_p9 = pnand %p814_p6, %p800_p8  ;;  %p822_p3 = scmp.lt.s32.totalorder %s820_s5, %s813_s11 }
  0x30   : > { %p817_p2 = pneg %p816_p9  ;;  %p823_p11 = por %p822_p3, %p821_p12 }
  0x32   : > { %p824_p13 = pnand %p823_p11, %p817_p2 }
  0x34   : > { %827 = shalt.err (!%p824_p13)
}
  0x35   : > { %s953_s23 = smov 256   ;;  %s954_s28 = smov 16  }
  0x36   : > { %676 = dma.hbm_to_vmem [thread:$0]  (!%p1093_p4), %s1087_s6, 1024, %s1089_s30, %s1098_s26, %s953_s23, %s953_s23, %s954_s28  }
  0x37   : > { %p170_p5 = scmp.lt.s32.totalorder %s950_s22, 5  ;;  %p1256_p8 = scmp.ge.s32.totalorder %s950_s22, 1 }
  0x39   : > { %p171_p10 = pnand %p1256_p8, %p170_p5 }
  0x3a   : > { %s176_s27 = sand.u32 (!%p171_p10), 1, %s926_s16  }
  0x3b   : > { %174 = sbr.rel (%p171_p10) target bundleno = 993 (0x3e1), region = 32  ;;  %s617_s11 = sshll.u32 (!%p171_p10), %s176_s27, 6 }
  0x3c   : > { %s177_s15 = scalar_lea.sflag (!%p171_p10), [#allocation4], %s176_s27  ;;  %s1130_s29 = scalar_lea.vmem (!%p171_p10), [#allocation3], %s617_s11 }
  0x42   : > { %901 = dma.done.wait (%p1057_p7), %s177_s15, 1024  }
  0x43   : > { %903 = vsyncadd (%p1057_p7), %s177_s15, 4294966272  ;;  %s200_s24 = sand.u32 1, %s914_s13   ;;  %p619_p12 = scmp.ne.s32.totalorder %s934_s18, 0 }
  0x44   : > { %s618_s26 = sshll.u32 %s200_s24, 5  ;;  %v207_v0 = vld [vmem:[%s1130_s29] sm:$0xff] (!%p619_p12)  ;;  %v208_v1 = vld [vmem:[%s1130_s29 + $0x8] sm:$0xff] (!%p619_p12)  ;;  %v209_v2 = vld [vmem:[%s1130_s29 + $0x10] sm:$0xff] (!%p619_p12)  ;;  %v955_v16 = vmov (!%p619_p12), 0.0|0.0   ;;  %vm956_vm0 = vmmov (!%p619_p12), 0   ;;  %v243_v18 = vlaneseq (!%p619_p12) }
  0x45   : > { %s1139_s6 = scalar_lea.vmem [#allocation6], %s618_s26  ;;  %206 = sbr.rel (%p619_p12) target bundleno = 836 (0x344), region = 40  ;;  %v231_v3 = vmax.f32 (!%p619_p12), %v207_v0, %v208_v1  ;;  %v215_v4 = vadd.f32 (!%p619_p12), %v208_v1, %v207_v0  ;;  %v210_v5 = vld [vmem:[%s1130_s29 + $0x18] sm:$0xff] (!%p619_p12)  ;;  %v213_v8 = vld [vmem:[%s1130_s29 + $0x30] sm:$0xff] (!%p619_p12)  ;;  %v211_v10 = vld [vmem:[%s1130_s29 + $0x20] sm:$0xff] (!%p619_p12)  ;;  %663 = vmatprep.subr.bf16.mxu0 (!%p619_p12), %v955_v16  ;;  %v957_v17 = vmov (!%p619_p12), 0.0  }
  0x46   : > { %v234_v6 = vmax.f32 (!%p619_p12), %v209_v2, %v210_v5  ;;  %v218_v7 = vadd.f32 (!%p619_p12), %v210_v5, %v209_v2  ;;  %v214_v9 = vld [vmem:[%s1130_s29 + $0x38] sm:$0xff] (!%p619_p12)  ;;  %v212_v11 = vld [vmem:[%s1130_s29 + $0x28] sm:$0xff] (!%p619_p12)  ;;  %652 = vmatprep.mubr.msk.f32.mxu0 (!%p619_p12), %vm956_vm0, %v957_v17  ;;  %v244_v21 = vand.u32 (!%p619_p12), 127, %v243_v18  ;;  %v250_v38 = vld [vmem:[%s1245_s1] sm:$0x3] (!%p619_p12)  ;;  %vm255_vm2 = vcmask (!%p619_p12), 261120  }
  0x47   : > { %232 = vmax.xlane.f32.xlu1 (!%p619_p12), %v231_v3  ;;  %216 = vadd.xlane.f32.xlu0 (!%p619_p12), %v215_v4  ;;  %v224_v12 = vadd.f32 (!%p619_p12), %v214_v9, %v213_v8  ;;  %v221_v13 = vadd.f32 (!%p619_p12), %v212_v11, %v211_v10  ;;  %v240_v14 = vmax.f32 (!%p619_p12), %v213_v8, %v214_v9  ;;  %vm330_vm3 = vcmask (!%p619_p12), 9216   ;;  %v251_v43 = vld [vmem:[%s1246_s2] sm:$0xff] (!%p619_p12)  ;;  %v252_v45 = vld [vmem:[%s1246_s2 + $0x8] sm:$0xff] (!%p619_p12)  ;;  %v253_v46 = vld [vmem:[%s1246_s2 + $0x10] sm:$0xff] (!%p619_p12) }
  0x48   : > { %v237_v15 = vmax.f32 (!%p619_p12), %v211_v10, %v212_v11  ;;  %vm245_vm1 = vcmp.eq.s32.totalorder (!%p619_p12), %v244_v21, 0  ;;  %vm334_vm4 = vcmask (!%p619_p12), 15360   ;;  %vm347_vm5 = vcmask (!%p619_p12), 1041408   ;;  %v254_v47 = vld [vmem:[%s1246_s2 + $0x18] sm:$0xff] (!%p619_p12) }
  0x49   : > { %657 = vmatprep.mubr.msk.f32.mxu1 (!%p619_p12), %vm334_vm4, %v251_v43  ;;  %vm460_vm6 = vcmask (!%p619_p12), 7168  }
  0x4b   : > { %235 = vmax.xlane.f32.xlu1 (!%p619_p12), %v234_v6  ;;  %219 = vadd.xlane.f32.xlu0 (!%p619_p12), %v218_v7 }
  0x4f   : > { %225 = vadd.xlane.f32.xlu1 %v224_v12  ;;  %222 = vadd.xlane.f32.xlu0 %v221_v13 }
  0x53   : > { %241 = vmax.xlane.f32.xlu1 %v240_v14  ;;  %238 = vmax.xlane.f32.xlu0 %v237_v15 }
  0xd4   : > { %v233_v19 = vpop.xlane.xlu1 %232  ;;  %v217_v20 = vpop.xlane.xlu0 %216 }
  0xd5   : > { %v227_v22 = vmul.f32 0.00390625, %v217_v20 }
  0xd7   : > { %v246_v26 = vsel %vm245_vm1, %v227_v22, %v233_v19 }
  0xd8   : > { %v236_v23 = vpop.xlane.xlu1 %235  ;;  %v220_v24 = vpop.xlane.xlu0 %219 }
  0xd9   : > { %v228_v25 = vmul.f32 0.00390625, %v220_v24 }
  0xdb   : > { %v247_v27 = vsel %vm245_vm1, %v228_v25, %v236_v23 }
  0xdc   : > { %v226_v28 = vpop.xlane.xlu1 %225  ;;  %v223_v29 = vpop.xlane.xlu0 %222  ;;  %v664_v30 = vpack.c.bf16 %v247_v27, %v246_v26 }
  0xdd   : > { %v230_v31 = vmul.f32 0.00390625, %v226_v28  ;;  %v229_v32 = vmul.f32 0.00390625, %v223_v29 }
  0xde   : > { %665 = vmatpush3.bf16.msra.mxu0 %v664_v30 }
  0xdf   : > { %666 = vmatprep.subr.bf16.mxu0 %v955_v16 }
  0xe0   : > { %v242_v33 = vpop.xlane.xlu1 %241  ;;  %v239_v34 = vpop.xlane.xlu0 %238 }
  0xe1   : > { %v249_v35 = vsel %vm245_vm1, %v230_v31, %v242_v33  ;;  %v248_v36 = vsel %vm245_vm1, %v229_v32, %v239_v34 }
  0xe2   : > { %v667_v37 = vpack.c.bf16 %v249_v35, %v248_v36 }
  0xe4   : > { %668 = vmatpush3.bf16.msra.mxu0 %v667_v37 }
  0xe7   : > { %653 = vmatmul.mubr.msk.f32.vlgmr.msra.gmra.mrb[0].mxu0 %vm255_vm2, %v250_v38 }
 0x1ba   : > { %v325_v39 = vpop.f32.mrb[0].mxu0 }
 0x1bb   : > { %v329_v40 = vmax.f32 %v325_v39, 0.0  ;;  %v654_v41 = vpop.f32.mrb[1].mxu0 }
 0x1bd   : > { %v331_v42 = vsel %vm330_vm3, %v329_v40, 0.0 }
 0x1be   : > { %332 = vadd.xlane.f32.xlu0 %v331_v42 }
 0x24b   : > { %v333_v44 = vpop.xlane.xlu0 %332 }
 0x24c   : > { %655 = vmatprep.subr.msk.mxu1 %vm347_vm5, %v333_v44 }
 0x24d   : > { %656 = vmatpush3.msk.msra.mxu1 %vm347_vm5, %v333_v44 }
 0x24e   : > { %658 = vmatmul.mubr.msk.f32.vlgmr.msra.gmra.mrb[0].mxu1 %vm334_vm4, %v252_v45 }
 0x24f   : > { %660 = vmatprep.mubr.msk.f32.mxu1 %vm334_vm4, %v253_v46 }
 0x252   : > { %661 = vmatmul.mubr.msk.f32.gmra.mrb[2].mxu1 %vm334_vm4, %v254_v47 }
 0x321   : > { %v659_v48 = vpop.f32.mrb[0].mxu1 }
 0x322   : > { %v437_v49 = vsub.f32 0.0, %v659_v48  ;;  %v417_v50 = vpop.f32.mrb[1].mxu1 }
 0x323   : > { %v436_v51 = vsub.f32 0.0, %v417_v50 }
 0x324   : > { %v442_v52 = vmul.f32 1.442695, %v437_v49 }
 0x325   : > { %v440_v53 = vmul.f32 1.442695, %v436_v51  ;;  %v662_v54 = vpop.f32.mrb[2].mxu1 }
 0x326   : > { %780 = vpow2.f32 %v442_v52  ;;  %v439_v55 = vsub.f32 0.0, %v662_v54  ;;  %v427_v56 = vpop.f32.mrb[3].mxu1 }
 0x327   : > { %782 = vpow2.f32 %v440_v53  ;;  %v438_v57 = vsub.f32 0.0, %v427_v56 }
 0x328   : > { %v446_v58 = vmul.f32 1.442695, %v439_v55 }
 0x329   : > { %v444_v59 = vmul.f32 1.442695, %v438_v57 }
 0x32a   : > { %784 = vpow2.f32 %v446_v58 }
 0x32b   : > { %786 = vpow2.f32 %v444_v59 }
 0x330   : > { %v781_v60 = vpop.eup %780 }
 0x331   : > { %v783_v61 = vpop.eup %782  ;;  %v449_v62 = vadd.f32 1.0, %v781_v60 }
 0x332   : > { %v448_v63 = vadd.f32 1.0, %v783_v61 }
 0x333   : > { %788 = vrcp.f32 %v449_v62 }
 0x334   : > { %v785_v0 = vpop.eup %784  ;;  %790 = vrcp.f32 %v448_v63 }
 0x335   : > { %v787_v1 = vpop.eup %786  ;;  %v451_v2 = vadd.f32 1.0, %v785_v0 }
 0x336   : > { %v450_v3 = vadd.f32 1.0, %v787_v1 }
 0x337   : > { %792 = vrcp.f32 %v451_v2 }
 0x338   : > { %794 = vrcp.f32 %v450_v3 }
 0x33d   : > { %v789_v4 = vpop.eup %788 }
 0x33e   : > { %v791_v5 = vpop.eup %790  ;;  %462 = vst.msk [vmem:[#allocation2 + $0x8] sm:$0xff] %vm460_vm6, %v789_v4 }
 0x33f   : > { %461 = vst.msk [vmem:[#allocation2] sm:$0xff] %vm460_vm6, %v791_v5 }
 0x341   : > { %v793_v6 = vpop.eup %792 }
 0x342   : > { %v795_v7 = vpop.eup %794  ;;  %464 = vst.msk [vmem:[#allocation2 + $0x18] sm:$0xff] %vm460_vm6, %v793_v6 }
 0x343   : > { %463 = vst.msk [vmem:[#allocation2 + $0x10] sm:$0xff] %vm460_vm6, %v795_v7 }
 0x344 PF: > { %v958_v10 = vmov 0   ;;  %s626_s30 = sshll.u32 %s934_s18, 7  ;;  %s629_s28 = sshll.u32 %s938_s19, 3 }
 0x345   : > { %797 = vset.pattern.permute.xlu1 %v958_v10  ;;  %796 = vset.pattern.permute.xlu0 %v958_v10  ;;  %v475_v12 = vld [vmem:[#allocation2 + $0x8] sm:$0xff]  ;;  %s466_s5 = sshra.s32 %s626_s30, 7  ;;  %s518_s11 = sadd.s32 %s934_s18, %s629_s28 }
 0x346   : > { %v474_v9 = vld [vmem:[#allocation2] sm:$0xff]  ;;  %s627_s23 = sshll.u32 %s466_s5, 3  ;;  %s630_s15 = sshll.u32 %s518_s11, 7 }
 0x347   : > { %480 = vperm.xlu0 %796, %v474_v9   ;;  %s469_s27 = scalar_lea.vmem %s1130_s29, %s627_s23 [#allocation3]  ;;  %s521_s26 = sshll.u32 %s1139_s6, 4  ;;  %s1177_s26 = int_to_ptr.vmem [resolvable:$true] %s521_s26 }
 0x348   : > { %v472_v13 = vld [vmem:[%s469_s27 + $0x20] sm:$0xff]  ;;  %v473_v19 = vld [vmem:[%s469_s27 + $0x30] sm:$0xff]  ;;  %s1175_s18 = scalar_lea.hbm %s1247_s3, %s630_s15  ;;  %s1183_s29 = scalar_lea.sflag [#allocation5], %s200_s24 }
 0x349   : > { %v477_v11 = vld [vmem:[#allocation2 + $0x18] sm:$0xff]  ;;  %v470_v14 = vld [vmem:[%s469_s27] sm:$0xff]  ;;  %v471_v20 = vld [vmem:[%s469_s27 + $0x10] sm:$0xff]  ;;  %s828_s30 = scalar_lea.vmem %s1177_s26, 512  ;;  %p1257_p2 = scmp.ne.s32.totalorder %s1253_s7, 0 }
 0x34a   : > { %v476_v8 = vld [vmem:[#allocation2 + $0x10] sm:$0xff]  ;;  %p829_p7 = scmp.ne.s32.totalorder %s1177_s26, %s828_s30  ;;  %s959_s5 = smov [#allocation6]  }
 0x34b   : > { %490 = vperm.xlu1 %797, %v476_v8   ;;  %485 = vperm.xlu0 %796, %v475_v12   ;;  %s832_s23 = sshll.u32 %s959_s5, 4  ;;  %s833_s23 = int_to_ptr.vmem [resolvable:$false] %s832_s23 }
 0x34c   : > { %p830_p4 = pnand %p829_p7, %p1257_p2  ;;  %s834_s28 = scalar_lea.vmem %s833_s23, 1024 }
 0x34d   : > { %p835_p1 = scmp.lt.s32.totalorder %s1177_s26, %s833_s23  ;;  %p836_p6 = scmp.lt.s32.totalorder %s834_s28, %s828_s30 }
 0x34e   : > { %p831_p0 = pneg %p830_p4 }
 0x34f   : > { %495 = vperm.xlu1 %797, %v477_v11   ;;  %p837_p9 = por %p836_p6, %p835_p1 }
 0x351   : > { %p838_p3 = pnand %p837_p9, %p831_p0 }
 0x3c6   : > { %v481_v16 = vpop.permute.xlu0 %480 }
 0x3c7   : > { %v498_v18 = vmul.f32 %v481_v16, %v470_v14 }
 0x3c9   : > { %502 = vst [vmem:[%s1139_s6] sm:$0xff] %v498_v18 }
 0x3ca   : > { %v491_v15 = vpop.permute.xlu1 %490  ;;  %v486_v22 = vpop.permute.xlu0 %485 }
 0x3cb   : > { %v500_v17 = vmul.f32 %v491_v15, %v472_v13  ;;  %v499_v24 = vmul.f32 %v486_v22, %v471_v20 }
 0x3cd   : > { %504 = vst [vmem:[%s1139_s6 + $0x10] sm:$0xff] %v500_v17  ;;  %503 = vst [vmem:[%s1139_s6 + $0x8] sm:$0xff] %v499_v24 }
 0x3ce   : > { %v496_v21 = vpop.permute.xlu1 %495 }
 0x3cf   : > { %v501_v23 = vmul.f32 %v496_v21, %v473_v19 }
 0x3d1   : > { %505 = vst [vmem:[%s1139_s6 + $0x18] sm:$0xff] %v501_v23 }
 0x3d2   : > { %841 = shalt.err (!%p838_p3)
}
 0x3d3   : > { %s842_s24 = scalar_lea.hbm %s1175_s18, 512  ;;  %s846_s11 = scalar_lea.hbm %s1247_s3, 2048 }
 0x3d4   : > { %p843_p11 = scmp.ne.s32.totalorder %s1175_s18, %s842_s24  ;;  %p847_p8 = scmp.lt.u32.totalorder %s1175_s18, %s1247_s3 }
 0x3d5   : > { %p848_p10 = scmp.lt.u32.totalorder %s846_s11, %s842_s24  ;;  %p850_p7 = scmp.lt.u32.totalorder %s842_s24, %s1175_s18 }
 0x3d6   : > { %p844_p13 = pnand %p843_p11, %p1257_p2 }
 0x3d7   : > { %p849_p12 = por %p848_p10, %p847_p8 }
 0x3d8   : > { %p845_p5 = pneg %p844_p13 }
 0x3d9   : > { %p851_p4 = por %p850_p7, %p849_p12 }
 0x3db   : > { %p852_p0 = pnand %p851_p4, %p845_p5 }
 0x3dd   : > { %855 = shalt.err (!%p852_p0)
}
 0x3de   : > { %s960_s19 = smov 128   ;;  %s961_s30 = smov 256  }
 0x3df   : > { %s962_s5 = smov 8  }
 0x3e0   : > { %671 = dma.vmem_to_hbm [thread:$0]  (%p1257_p2), %s1177_s26, 512, %s1175_s18, %s1183_s29, %s960_s19, %s961_s30, %s962_s5  }
 0x3e1 PF: > { %p682_p1 = scmp.ge.s32.totalorder %s950_s22, 2  ;;  %s536_s23 = sand.u32 1, %s910_s12  }
 0x3e2   : > { %p1258_p6 = scmp.ne.s32.totalorder %s1254_s10, 0  ;;  %s537_s28 = scalar_lea.sflag [#allocation5], %s536_s23 }
 0x3e4   : > { %p678_p9 = pnand %p682_p1, %p1258_p6 }
 0x3e6   : > { %905 = dma.done.wait (!%p678_p9), %s537_s28, 512  }
 0x3e7   : > { %907 = vsyncadd (!%p678_p9), %s537_s28, 4294966784  ;;  %s19_s22 = sadd.s32 1, %s950_s22   ;;  %s1259_s7 = sld [smem:[#allocation9_spill]] }
 0x3e8   : > { %p16_p3 = scmp.ge.s32.totalorder %s19_s22, 6   ;;  %s1260_s12 = smov %s914_s13 }
 0x3e9   : > { %s1261_s13 = smov %s918_s14  ;;  %s1262_s14 = smov %s1073_s9 }
 0x3ea   : > { %s1263_s15 = smov %s926_s16  ;;  %s1264_s16 = smov %s930_s17 }
 0x3eb   : > { %s1265_s17 = smov %s1070_s8  ;;  %s1266_s18 = smov %s942_s20 }
 0x3ec   : > { %s1267_s19 = smov %s946_s21  ;;  %s1268_s20 = smov %s1271_s25 }
 0x3ed   : > { %s1269_s21 = smov %s1259_s7  ;;  %18 = sbr.rel (!%p16_p3) target bundleno = 9 (0x9), region = 82 }
 0x3f4   :  { %542 = vsyncpa [#allocation4], 1 }
 0x3f5   :  { %544 = vsyncpa [#allocation4 + $0x1], 1 }
 0x3f6   :  { %545 = vsyncpa [#allocation5], 1 }
 0x3f7   :  { %547 = vsyncpa [#allocation5 + $0x1], 1 }

</bundles_post_ra>
